<compile_context>
chip_gen: v5e
topology: v5e:2x2
jax: 0.10.0
libtpu: 0.0.40
codegen_flags: <defaults>
</compile_context>

<pallas_src>
import jax
import jax.numpy as jnp
from jax.experimental import pallas as pl
from jax.experimental.pallas import tpu as pltpu

INPUT_DIM = 11
H1, H2, H3 = 128, 64, 16


def _round_up(n, m):
    return ((n + m - 1) // m) * m


def mlp_kernel(x_ref,
               w1_ref, t1_ref,
               w2_ref, t2_ref,
               w3_ref, t3_ref,
               w4_ref, b4_ref,
               o_ref):
    def lrelu(v):
        # identical to leaky_relu with slope 0.01 (slope < 1)
        return jnp.maximum(v, jnp.float32(0.01) * v)

    x = x_ref[...]                                                     # (TB, 11)

    # fc1+bn1+lrelu   (dropout = identity in eval; BN scale folded into w1)
    h = lrelu(jnp.dot(x, w1_ref[...], preferred_element_type=jnp.float32)
              + t1_ref[...])                                           # (TB, 128)
    # fc2+bn2+lrelu
    h = lrelu(jnp.dot(h, w2_ref[...], preferred_element_type=jnp.float32)
              + t2_ref[...])                                           # (TB, 64)
    # fc3+bn3+lrelu
    h = lrelu(jnp.dot(h, w3_ref[...], preferred_element_type=jnp.float32)
              + t3_ref[...])                                           # (TB, 16)

    # fc4: N=1 output -> lane reduction on the VPU instead of an MXU matmul
    o_ref[...] = jnp.sum(h * w4_ref[...], axis=-1, keepdims=True) + b4_ref[...]


def mlp_forward(x, params, tb=512):
    """x: (B, 11) f32.  params: folded weights (see make_params)."""
    w1, t1, w2, t2, w3, t3, w4_row, b4 = params
    B, D = x.shape
    assert D == INPUT_DIM

    # Tile size: multiple of 8 (f32 sublane); pad B up to a multiple of TB.
    tb = max(8, min(tb, _round_up(B, 8)))
    tb = _round_up(tb, 8)
    Bp = _round_up(B, tb)
    if Bp != B:
        x = jnp.pad(x, ((0, Bp - B), (0, 0)))
    grid = (Bp // tb,)

    # VMEM budget: 2x double-buffered x/out tiles + intermediates + weights,
    # with headroom.  Safe under the 64 MiB v7x per-core VMEM for tb<=8192.
    io_bytes = 2 * 2 * tb * (INPUT_DIM + 1) * 4
    inter_bytes = 2 * tb * (H1 + H2 + H3) * 4
    weight_bytes = 4 * (INPUT_DIM * H1 + H1 * H2 + H2 * H3 + H3 + H1 + H2 + H3 + 1)
    vmem_limit = min(48 * 1024 * 1024,
                     max(16 * 1024 * 1024, 2 * (io_bytes + inter_bytes + weight_bytes)))

    resident = lambda shape: pl.BlockSpec(shape, lambda i: (0, 0))

    out = pl.pallas_call(
        mlp_kernel,
        out_shape=jax.ShapeDtypeStruct((Bp, 1), jnp.float32),
        grid=grid,
        in_specs=[
            pl.BlockSpec((tb, INPUT_DIM), lambda i: (i, 0)),   # x tile
            resident((INPUT_DIM, H1)), resident((1, H1)),      # w1', t1
            resident((H1, H2)),        resident((1, H2)),      # w2', t2
            resident((H2, H3)),        resident((1, H3)),      # w3', t3
            resident((1, H3)),         resident((1, 1)),       # w4 row, b4
        ],
        out_specs=pl.BlockSpec((tb, 1), lambda i: (i, 0)),
        compiler_params=pltpu.CompilerParams(
            dimension_semantics=("parallel",),
            vmem_limit_bytes=vmem_limit,
        ),
    )(x, w1, t1, w2, t2, w3, t3, w4_row, b4)

    return out[:B]


def fold_layer(w, b, gamma, beta, mean, var, eps=1e-5):
    """Fold Linear(bias) + BatchNorm1d(eval) into (W * s) and a shift row."""
    s = gamma / jnp.sqrt(var + eps)
    w_folded = (w * s.reshape(1, -1)).astype(jnp.float32)
    t = ((b - mean) * s + beta).reshape(1, -1).astype(jnp.float32)
    return w_folded, t


def make_params(key, input_dim=INPUT_DIM):
    dims = [(input_dim, H1), (H1, H2), (H2, H3), (H3, 1)]
    keys = jax.random.split(key, 24)
    ki = iter(range(24))

    def linear(shape):
        fan_in = shape[0]
        bound = 1.0 / jnp.sqrt(fan_in)
        w = jax.random.uniform(keys[next(ki)], shape, jnp.float32, -bound, bound)
        b = jax.random.uniform(keys[next(ki)], (shape[1],), jnp.float32, -bound, bound)
        return w, b

    def bn(n):
        gamma = 1.0 + 0.1 * jax.random.normal(keys[next(ki)], (n,), jnp.float32)
        beta = 0.1 * jax.random.normal(keys[next(ki)], (n,), jnp.float32)
        mean = 0.1 * jax.random.normal(keys[next(ki)], (n,), jnp.float32)
        var = jnp.abs(1.0 + 0.1 * jax.random.normal(keys[next(ki)], (n,), jnp.float32))
        return gamma, beta, mean, var

    w1, b1 = linear(dims[0]); bn1 = bn(H1)
    w2, b2 = linear(dims[1]); bn2 = bn(H2)
    w3, b3 = linear(dims[2]); bn3 = bn(H3)
    w4, b4 = linear(dims[3])

    w1f, t1 = fold_layer(w1, b1, *bn1)
    w2f, t2 = fold_layer(w2, b2, *bn2)
    w3f, t3 = fold_layer(w3, b3, *bn3)
    w4_row = w4.T.astype(jnp.float32)            # (1, 16)
    b4 = b4.reshape(1, 1).astype(jnp.float32)    # (1, 1)

    return (w1f, t1, w2f, t2, w3f, t3, w4_row, b4)


def reference_forward(x, params):
    w1, t1, w2, t2, w3, t3, w4_row, b4 = params

    def lrelu(v):
        return jnp.where(v > 0, v, 0.01 * v)

    h = lrelu(x @ w1 + t1)
    h = lrelu(h @ w2 + t2)
    h = lrelu(h @ w3 + t3)
    return h @ w4_row.T + b4


if __name__ == "__main__":
    key = jax.random.PRNGKey(0)
    k_x, k_p = jax.random.split(key)

    # small test shapes; B intentionally not a multiple of the tile to
    # exercise the padding / ragged-last-row path.
    B = 50
    x = jax.random.normal(k_x, (B, INPUT_DIM), jnp.float32)
    params = make_params(k_p, INPUT_DIM)

    out = mlp_forward(x, params, tb=32)
    jax.block_until_ready(out)

    ref = reference_forward(x, params)
    assert out.shape == (B, 1)
    assert jnp.allclose(out, ref, atol=1e-4, rtol=1e-4)

    print("KERNEL_OK")
</pallas_src>

<mosaic_0001>
module attributes {stable_mosaic.version = 11 : i64} {
  func.func @mlp_kernel(%arg0: i32, %arg1: memref<32x11xf32, #tpu.memory_space<vmem>>, %arg2: memref<11x128xf32, #tpu.memory_space<vmem>>, %arg3: memref<1x128xf32, #tpu.memory_space<vmem>>, %arg4: memref<128x64xf32, #tpu.memory_space<vmem>>, %arg5: memref<1x64xf32, #tpu.memory_space<vmem>>, %arg6: memref<64x16xf32, #tpu.memory_space<vmem>>, %arg7: memref<1x16xf32, #tpu.memory_space<vmem>>, %arg8: memref<1x16xf32, #tpu.memory_space<vmem>>, %arg9: memref<1x1xf32, #tpu.memory_space<vmem>>, %arg10: memref<32x1xf32, #tpu.memory_space<vmem>>) attributes {dimension_semantics = [#tpu.dimension_semantics<parallel>], iteration_bounds = array<i64: 2>, scalar_prefetch = 0 : i64, scratch_operands = 0 : i64, tpu.core_type = #tpu.core_type<tc>, window_params = [{transform_indices = @transform_0, window_bounds = array<i64: 32, 11>}, {pipeline_mode = #tpu.pipeline_mode<synchronous>, transform_indices = @transform_1, window_bounds = array<i64: 11, 128>}, {pipeline_mode = #tpu.pipeline_mode<synchronous>, transform_indices = @transform_2, window_bounds = array<i64: 1, 128>}, {pipeline_mode = #tpu.pipeline_mode<synchronous>, transform_indices = @transform_3, window_bounds = array<i64: 128, 64>}, {pipeline_mode = #tpu.pipeline_mode<synchronous>, transform_indices = @transform_4, window_bounds = array<i64: 1, 64>}, {pipeline_mode = #tpu.pipeline_mode<synchronous>, transform_indices = @transform_5, window_bounds = array<i64: 64, 16>}, {pipeline_mode = #tpu.pipeline_mode<synchronous>, transform_indices = @transform_6, window_bounds = array<i64: 1, 16>}, {pipeline_mode = #tpu.pipeline_mode<synchronous>, transform_indices = @transform_7, window_bounds = array<i64: 1, 16>}, {pipeline_mode = #tpu.pipeline_mode<synchronous>, transform_indices = @transform_8, window_bounds = array<i64: 1, 1>}, {transform_indices = @transform_9, window_bounds = array<i64: 32, 1>}]} {
    %c0 = arith.constant 0 : index
    %c0_0 = arith.constant 0 : index
    %0 = vector.load %arg1[%c0, %c0_0] : memref<32x11xf32, #tpu.memory_space<vmem>>, vector<32x11xf32>
    %c0_1 = arith.constant 0 : index
    %c0_2 = arith.constant 0 : index
    %1 = vector.load %arg2[%c0_1, %c0_2] : memref<11x128xf32, #tpu.memory_space<vmem>>, vector<11x128xf32>
    %cst = arith.constant dense<0.000000e+00> : vector<32x128xf32>
    %2 = tpu.matmul %0, %1, %cst {dimension_numbers = #tpu.dot_dimension_numbers<[1], [0], [0], [1], [0, 0, 1, 1], [], []>} : vector<32x11xf32>, vector<11x128xf32>, vector<32x128xf32> -> vector<32x128xf32>
    %c0_3 = arith.constant 0 : index
    %c0_4 = arith.constant 0 : index
    %3 = vector.load %arg3[%c0_3, %c0_4] : memref<1x128xf32, #tpu.memory_space<vmem>>, vector<1x128xf32>
    %4 = vector.broadcast %3 : vector<1x128xf32> to vector<32x128xf32>
    %5 = arith.addf %2, %4 : vector<32x128xf32>
    %cst_5 = arith.constant 0.00999999977 : f32
    %6 = vector.broadcast %cst_5 : f32 to vector<32x128xf32>
    %7 = arith.mulf %6, %5 : vector<32x128xf32>
    %8 = arith.maximumf %5, %7 : vector<32x128xf32>
    %c0_6 = arith.constant 0 : index
    %c0_7 = arith.constant 0 : index
    %9 = vector.load %arg4[%c0_6, %c0_7] : memref<128x64xf32, #tpu.memory_space<vmem>>, vector<128x64xf32>
    %cst_8 = arith.constant dense<0.000000e+00> : vector<32x64xf32>
    %10 = tpu.matmul %8, %9, %cst_8 {dimension_numbers = #tpu.dot_dimension_numbers<[1], [0], [0], [1], [0, 0, 1, 1], [], []>} : vector<32x128xf32>, vector<128x64xf32>, vector<32x64xf32> -> vector<32x64xf32>
    %c0_9 = arith.constant 0 : index
    %c0_10 = arith.constant 0 : index
    %11 = vector.load %arg5[%c0_9, %c0_10] : memref<1x64xf32, #tpu.memory_space<vmem>>, vector<1x64xf32>
    %12 = vector.broadcast %11 : vector<1x64xf32> to vector<32x64xf32>
    %13 = arith.addf %10, %12 : vector<32x64xf32>
    %cst_11 = arith.constant 0.00999999977 : f32
    %14 = vector.broadcast %cst_11 : f32 to vector<32x64xf32>
    %15 = arith.mulf %14, %13 : vector<32x64xf32>
    %16 = arith.maximumf %13, %15 : vector<32x64xf32>
    %c0_12 = arith.constant 0 : index
    %c0_13 = arith.constant 0 : index
    %17 = vector.load %arg6[%c0_12, %c0_13] : memref<64x16xf32, #tpu.memory_space<vmem>>, vector<64x16xf32>
    %cst_14 = arith.constant dense<0.000000e+00> : vector<32x16xf32>
    %18 = tpu.matmul %16, %17, %cst_14 {dimension_numbers = #tpu.dot_dimension_numbers<[1], [0], [0], [1], [0, 0, 1, 1], [], []>} : vector<32x64xf32>, vector<64x16xf32>, vector<32x16xf32> -> vector<32x16xf32>
    %c0_15 = arith.constant 0 : index
    %c0_16 = arith.constant 0 : index
    %19 = vector.load %arg7[%c0_15, %c0_16] : memref<1x16xf32, #tpu.memory_space<vmem>>, vector<1x16xf32>
    %20 = vector.broadcast %19 : vector<1x16xf32> to vector<32x16xf32>
    %21 = arith.addf %18, %20 : vector<32x16xf32>
    %cst_17 = arith.constant 0.00999999977 : f32
    %22 = vector.broadcast %cst_17 : f32 to vector<32x16xf32>
    %23 = arith.mulf %22, %21 : vector<32x16xf32>
    %24 = arith.maximumf %21, %23 : vector<32x16xf32>
    %c0_18 = arith.constant 0 : index
    %c0_19 = arith.constant 0 : index
    %25 = vector.load %arg8[%c0_18, %c0_19] : memref<1x16xf32, #tpu.memory_space<vmem>>, vector<1x16xf32>
    %26 = vector.broadcast %25 : vector<1x16xf32> to vector<32x16xf32>
    %27 = arith.mulf %24, %26 : vector<32x16xf32>
    %cst_20 = arith.constant dense<0.000000e+00> : vector<32xf32>
    %28 = vector.multi_reduction <add>, %27, %cst_20 [1] : vector<32x16xf32> to vector<32xf32>
    %29 = vector.shape_cast %28 : vector<32xf32> to vector<32x1xf32>
    %c0_21 = arith.constant 0 : index
    %c0_22 = arith.constant 0 : index
    %30 = vector.load %arg9[%c0_21, %c0_22] : memref<1x1xf32, #tpu.memory_space<vmem>>, vector<1x1xf32>
    %31 = vector.broadcast %30 : vector<1x1xf32> to vector<32x1xf32>
    %32 = arith.addf %29, %31 : vector<32x1xf32>
    %c0_23 = arith.constant 0 : index
    %c0_24 = arith.constant 0 : index
    %33 = vector.load %arg10[%c0_23, %c0_24] : memref<32x1xf32, #tpu.memory_space<vmem>>, vector<32x1xf32>
    tpu.vector_store %arg10[%c0_23, %c0_24], %32 {strides = array<i32>} : memref<32x1xf32, #tpu.memory_space<vmem>>, vector<32x1xf32>,
    return
  }
  func.func @transform_0(%arg0: i32) -> (i32, i32) {
    %c0_i32 = arith.constant 0 : i32
    %c0_i32_0 = arith.constant 0 : i32
    return %arg0, %c0_i32 : i32, i32
  }
  func.func @transform_1(%arg0: i32) -> (i32, i32) {
    %c0_i32 = arith.constant 0 : i32
    %c0_i32_0 = arith.constant 0 : i32
    %c0_i32_1 = arith.constant 0 : i32
    return %c0_i32, %c0_i32_0 : i32, i32
  }
  func.func @transform_2(%arg0: i32) -> (i32, i32) {
    %c0_i32 = arith.constant 0 : i32
    %c0_i32_0 = arith.constant 0 : i32
    %c0_i32_1 = arith.constant 0 : i32
    return %c0_i32, %c0_i32_0 : i32, i32
  }
  func.func @transform_3(%arg0: i32) -> (i32, i32) {
    %c0_i32 = arith.constant 0 : i32
    %c0_i32_0 = arith.constant 0 : i32
    %c0_i32_1 = arith.constant 0 : i32
    return %c0_i32, %c0_i32_0 : i32, i32
  }
  func.func @transform_4(%arg0: i32) -> (i32, i32) {
    %c0_i32 = arith.constant 0 : i32
    %c0_i32_0 = arith.constant 0 : i32
    %c0_i32_1 = arith.constant 0 : i32
    return %c0_i32, %c0_i32_0 : i32, i32
  }
  func.func @transform_5(%arg0: i32) -> (i32, i32) {
    %c0_i32 = arith.constant 0 : i32
    %c0_i32_0 = arith.constant 0 : i32
    %c0_i32_1 = arith.constant 0 : i32
    return %c0_i32, %c0_i32_0 : i32, i32
  }
  func.func @transform_6(%arg0: i32) -> (i32, i32) {
    %c0_i32 = arith.constant 0 : i32
    %c0_i32_0 = arith.constant 0 : i32
    %c0_i32_1 = arith.constant 0 : i32
    return %c0_i32, %c0_i32_0 : i32, i32
  }
  func.func @transform_7(%arg0: i32) -> (i32, i32) {
    %c0_i32 = arith.constant 0 : i32
    %c0_i32_0 = arith.constant 0 : i32
    %c0_i32_1 = arith.constant 0 : i32
    return %c0_i32, %c0_i32_0 : i32, i32
  }
  func.func @transform_8(%arg0: i32) -> (i32, i32) {
    %c0_i32 = arith.constant 0 : i32
    %c0_i32_0 = arith.constant 0 : i32
    %c0_i32_1 = arith.constant 0 : i32
    return %c0_i32, %c0_i32_0 : i32, i32
  }
  func.func @transform_9(%arg0: i32) -> (i32, i32) {
    %c0_i32 = arith.constant 0 : i32
    %c0_i32_0 = arith.constant 0 : i32
    return %arg0, %c0_i32 : i32, i32
  }
}

</mosaic_0001>

<bundles_post_ra>
// kernel: tpu_custom_call.1
= control target key start
LH: loop header
LB: loop body
LE: loop exit
PB: predicated region body
PF: predicated region fallthrough
CT: control target
= control target key end

     0   :  { %s737_s11 = smov 0   ;;  %s869_s0 = inlined_call_operand.vmem [shape: f32[64,11], index: 0, kind: input, shape index: {}]   ;;  %s870_s1 = inlined_call_operand.vmem [shape: f32[11,128], index: 1, kind: input, shape index: {}]   ;;  %s871_s2 = inlined_call_operand.vmem [shape: f32[1,128], index: 2, kind: input, shape index: {}]   ;;  %s872_s3 = inlined_call_operand.vmem [shape: f32[128,64], index: 3, kind: input, shape index: {}]   ;;  %s873_s4 = inlined_call_operand.vmem [shape: f32[1,64], index: 4, kind: input, shape index: {}]   ;;  %s874_s5 = inlined_call_operand.vmem [shape: f32[64,16], index: 5, kind: input, shape index: {}]   ;;  %s875_s6 = inlined_call_operand.vmem [shape: f32[1,16], index: 6, kind: input, shape index: {}]   ;;  %s876_s7 = inlined_call_operand.vmem [shape: f32[1,16], index: 7, kind: input, shape index: {}]   ;;  %s877_s8 = inlined_call_operand.<no memory space> [shape: f32[1,1], index: 8, kind: input, shape index: {}]   ;;  %s878_s9 = inlined_call_operand.vmem [shape: f32[64,1], index: 9, kind: output, shape index: {}]  }
   0x1   :  { %v14_v0 = vstv %s877_s8 }
   0x2   :  { %15 = vst [vmem:[#allocation2] sm:$0x1] %v14_v0 }
   0x3 LB: > { %s611_s12 = sadd.s32 4294967295, %s682_s11   ;;  %p615_p0 = scmp.ge.s32.totalorder %s682_s11, 1  ;;  %s682_s11 = sphi %s737_s11, %s21_s11  }
   0x4   : > { %p290_p1 = scmp.lt.s32.totalorder %s682_s11, 3 }
   0x6   : > { %p291_p2 = pnand %p615_p0, %p290_p1 }
   0x7   : > { %s616_s16 = sshll.u32 (!%p291_p2), %s611_s12, 2 }
   0x8   : > { %294 = sbr.rel (%p291_p2) target bundleno = 571 (0x23b), region = 56  ;;  %p327_p3 = scmp.lt.s32.totalorder (!%p291_p2), %s616_s16, 7 }
   0xd   : > { %v343_v1 = vld [vmem:[%s870_s1 + $0x8] sm:$0x7]  ;;  %vm361_vm0 = vcmask 1042432   ;;  %v342_v2 = vld [vmem:[%s870_s1] sm:$0xff]  ;;  %v417_v3 = vld [vmem:[%s872_s3 + $0x78] sm:$0xff]  ;;  %s880_s16 = smov (!%p327_p3, %s616_s16), 7 }
   0xe   : > { %620 = vmatpush.msk.msra.mxu0 %vm361_vm0, %v343_v1  ;;  %631 = vmatpush.msra.mxu1 %v417_v3  ;;  %v416_v4 = vld [vmem:[%s872_s3 + $0x70] sm:$0xff]  ;;  %s617_s21 = sshll.u32 %s880_s16, 3  ;;  %vm348_vm1 = vcmask 89088   ;;  %v415_v5 = vld [vmem:[%s872_s3 + $0x68] sm:$0xff]  ;;  %v414_v7 = vld [vmem:[%s872_s3 + $0x60] sm:$0xff]  ;;  %vm471_vm2 = vcmask 523264  }
   0xf   : > { %632 = vmatpush.msra.mxu3 %v417_v3  ;;  %s768_s26 = scalar_lea.vmem %s869_s0, %s617_s21  ;;  %v413_v8 = vld [vmem:[%s872_s3 + $0x58] sm:$0xff]  ;;  %v412_v9 = vld [vmem:[%s872_s3 + $0x50] sm:$0xff]  ;;  %v411_v11 = vld [vmem:[%s872_s3 + $0x48] sm:$0xff]  ;;  %vm529_vm3 = vcmask 130048   ;;  %s336_s22 = scalar_lea.vmem %s878_s9, %s617_s21  ;;  %vm550_vm4 = vcmask 7168  }
  0x10   : > { %380 = vmatpush.msra.mxu0 %v342_v2  ;;  %633 = vmatpush.msra.mxu1 %v416_v4  ;;  %v338_v6 = vld [vmem:[%s768_s26] sm:$0xff]  ;;  %v339_v10 = vld [vmem:[%s768_s26 + $0x8] sm:$0xff]  ;;  %v409_v13 = vld [vmem:[%s872_s3 + $0x38] sm:$0xff] }
  0x11   : > { %634 = vmatpush.msra.mxu3 %v416_v4  ;;  %621 = vmatmul.msk.f32.vlgmr.msra.gmra.mxu0 %vm348_vm1, %v338_v6  ;;  %v410_v12 = vld [vmem:[%s872_s3 + $0x40] sm:$0xff]  ;;  %v408_v14 = vld [vmem:[%s872_s3 + $0x30] sm:$0xff]  ;;  %v407_v16 = vld [vmem:[%s872_s3 + $0x28] sm:$0xff] }
  0x12   : > { %422 = vmatpush.msrb.mxu0 %v417_v3  ;;  %635 = vmatpush.msra.mxu1 %v415_v5  ;;  %v340_v15 = vld [vmem:[%s768_s26 + $0x10] sm:$0xff]  ;;  %v406_v17 = vld [vmem:[%s872_s3 + $0x20] sm:$0xff]  ;;  %v341_v18 = vld [vmem:[%s768_s26 + $0x18] sm:$0xff] }
  0x13   : > { %636 = vmatpush.msra.mxu3 %v415_v5  ;;  %v405_v19 = vld [vmem:[%s872_s3 + $0x18] sm:$0xff]  ;;  %v404_v20 = vld [vmem:[%s872_s3 + $0x10] sm:$0xff]  ;;  %v403_v21 = vld [vmem:[%s872_s3 + $0x8] sm:$0xff] }
  0x14   : > { %423 = vmatpush.msrb.mxu0 %v416_v4  ;;  %637 = vmatpush.msra.mxu1 %v414_v7  ;;  %v402_v22 = vld [vmem:[%s872_s3] sm:$0xff]  ;;  %v466_v24 = vld [vmem:[%s874_s5 + $0x38] sm:$0xff]  ;;  %v465_v25 = vld [vmem:[%s874_s5 + $0x30] sm:$0xff] }
  0x15   : > { %638 = vmatpush.msra.mxu3 %v414_v7  ;;  %v671_v23 = vld [vmem:[%s871_s2] ss:$0 sm:$0xff]  ;;  %492 = vmatpush.msra.mxu2 %v466_v24  ;;  %v464_v28 = vld [vmem:[%s874_s5 + $0x28] sm:$0xff]  ;;  %v462_v44 = vld [vmem:[%s874_s5 + $0x18] sm:$0xff] }
  0x16   : > { %424 = vmatpush.msrb.mxu0 %v415_v5  ;;  %639 = vmatpush.msra.mxu1 %v413_v8  ;;  %v463_v30 = vld [vmem:[%s874_s5 + $0x20] sm:$0xff]  ;;  %v461_v45 = vld [vmem:[%s874_s5 + $0x10] sm:$0xff]  ;;  %v460_v46 = vld [vmem:[%s874_s5 + $0x8] sm:$0xff] }
  0x17   : > { %640 = vmatpush.msra.mxu3 %v413_v8  ;;  %493 = vmatpush.msra.mxu2 %v465_v25  ;;  %v459_v47 = vld [vmem:[%s874_s5] sm:$0xff] }
  0x18   : > { %425 = vmatpush.msrb.mxu0 %v414_v7  ;;  %641 = vmatpush.msra.mxu1 %v412_v9  ;;  %v672_v48 = vld [vmem:[%s873_s4] ss:$0 sm:$0xff] }
  0x19   : > { %642 = vmatpush.msra.mxu3 %v412_v9  ;;  %622 = vmatmul.msk.f32.gmra.mxu0 %vm348_vm1, %v339_v10  ;;  %v673_v1 = vld [vmem:[%s875_s6] ss:$0 sm:$0xff] }
  0x1a   : > { %426 = vmatpush.msrb.mxu0 %v413_v8  ;;  %643 = vmatpush.msra.mxu1 %v411_v11  ;;  %v674_v5 = vld [vmem:[%s876_s7] ss:$0 sm:$0xff] }
  0x1b   : > { %644 = vmatpush.msra.mxu3 %v411_v11  ;;  %494 = vmatpush.msra.mxu2 %v464_v28 }
  0x1c   : > { %427 = vmatpush.msrb.mxu0 %v412_v9  ;;  %645 = vmatpush.msra.mxu1 %v410_v12 }
  0x1d   : > { %646 = vmatpush.msra.mxu3 %v410_v12  ;;  %495 = vmatpush.msra.mxu2 %v463_v30 }
  0x1e   : > { %428 = vmatpush.msrb.mxu0 %v411_v11  ;;  %647 = vmatpush.msra.mxu1 %v409_v13 }
  0x1f   : > { %648 = vmatpush.msra.mxu3 %v409_v13  ;;  %496 = vmatpush.msra.mxu2 %v462_v44 }
  0x20   : > { %429 = vmatpush.msrb.mxu0 %v410_v12  ;;  %649 = vmatpush.msra.mxu1 %v408_v14 }
  0x21   : > { %650 = vmatpush.msra.mxu3 %v408_v14  ;;  %623 = vmatmul.msk.f32.gmra.mxu0 %vm348_vm1, %v340_v15 }
  0x22   : > { %430 = vmatpush.msrb.mxu0 %v409_v13  ;;  %651 = vmatpush.msra.mxu1 %v407_v16 }
  0x23   : > { %652 = vmatpush.msra.mxu3 %v407_v16  ;;  %497 = vmatpush.msra.mxu2 %v461_v45 }
  0x24   : > { %431 = vmatpush.msrb.mxu0 %v408_v14  ;;  %653 = vmatpush.msra.mxu1 %v406_v17 }
  0x25   : > { %654 = vmatpush.msra.mxu3 %v406_v17  ;;  %498 = vmatpush.msra.mxu2 %v460_v46 }
  0x26   : > { %432 = vmatpush.msrb.mxu0 %v407_v16  ;;  %655 = vmatpush.msra.mxu1 %v405_v19 }
  0x27   : > { %656 = vmatpush.msra.mxu3 %v405_v19  ;;  %499 = vmatpush.msra.mxu2 %v459_v47 }
  0x28   : > { %433 = vmatpush.msrb.mxu0 %v406_v17  ;;  %657 = vmatpush.msra.mxu1 %v404_v20 }
  0x29   : > { %624 = vmatmul.msk.f32.gmra.mxu0 %vm348_vm1, %v341_v18  ;;  %658 = vmatpush.msra.mxu3 %v404_v20 }
  0x2a   : > { %434 = vmatpush.msrb.mxu0 %v405_v19  ;;  %659 = vmatpush.msra.mxu1 %v403_v21 }
  0x2b   : > { %660 = vmatpush.msra.mxu3 %v403_v21 }
  0x2c   : > { %435 = vmatpush.msrb.mxu0 %v404_v20  ;;  %661 = vmatpush.msra.mxu1 %v402_v22 }
  0x2d   : > { %662 = vmatpush.msra.mxu3 %v402_v22 }
  0x2e   : > { %436 = vmatpush.msrb.mxu0 %v403_v21 }
  0x30   : > { %437 = vmatpush.msrb.mxu0 %v402_v22 }
  0x8e   : > { %v382_v26 = vpop.f32.mrf.mxu0 }
  0x8f   : > { %v383_v27 = vadd.f32 %v671_v23, %v382_v26 }
  0x91   : > { %v394_v29 = vmul.f32 0.01, %v383_v27 }
  0x93   : > { %v398_v31 = vmax.f32 %v383_v27, %v394_v29  ;;  %v675_v27 = vld [vmem:[#allocation2] ss:$0 sm:$0xff] }
  0x95   : > { %438 = vmatmul.f32.vlgmr.msrb.gmra.mxu0 %v398_v31 }
  0x96   : > { %v385_v32 = vpop.f32.mrf.mxu0 }
  0x97   : > { %v386_v33 = vadd.f32 %v671_v23, %v385_v32 }
  0x99   : > { %v395_v34 = vmul.f32 0.01, %v386_v33 }
  0x9b   : > { %v399_v35 = vmax.f32 %v386_v33, %v395_v34 }
  0x9d   : > { %441 = vmatmul.f32.vlgmr.msra.gmra.mxu1 %v399_v35 }
  0x9e   : > { %v388_v36 = vpop.f32.mrf.mxu0 }
  0x9f   : > { %v389_v37 = vadd.f32 %v671_v23, %v388_v36 }
  0xa1   : > { %v396_v38 = vmul.f32 0.01, %v389_v37 }
  0xa3   : > { %v400_v39 = vmax.f32 %v389_v37, %v396_v38 }
  0xa5   : > { %444 = vmatmul.f32.vlgmr.msra.gmra.mxu3 %v400_v39 }
  0xa6   : > { %v391_v40 = vpop.f32.mrf.mxu0 }
  0xa7   : > { %v392_v41 = vadd.f32 %v671_v23, %v391_v40 }
  0xa9   : > { %v397_v42 = vmul.f32 0.01, %v392_v41 }
  0xab   : > { %v401_v43 = vmax.f32 %v392_v41, %v397_v42 }
  0xad   : > { %447 = vmatmul.f32.gmra.mxu3 %v401_v43 }
 0x112   : > { %v439_v49 = vpop.f32.mrf.mxu0 }
 0x113   : > { %v440_v50 = vadd.f32 %v672_v48, %v439_v49 }
 0x115   : > { %v451_v51 = vmul.f32 0.01, %v440_v50 }
 0x117   : > { %v455_v52 = vmax.f32 %v440_v50, %v451_v51 }
 0x119   : > { %625 = vmatmul.msk.f32.vlgmr.msra.gmra.mxu2 %vm471_vm2, %v455_v52 }
 0x11a   : > { %v442_v53 = vpop.f32.mrf.mxu1 }
 0x11b   : > { %v443_v54 = vadd.f32 %v672_v48, %v442_v53 }
 0x11d   : > { %v452_v55 = vmul.f32 0.01, %v443_v54 }
 0x11f   : > { %v456_v56 = vmax.f32 %v443_v54, %v452_v55 }
 0x121   : > { %626 = vmatmul.msk.f32.gmra.mxu2 %vm471_vm2, %v456_v56 }
 0x128   : > { %v445_v57 = vpop.f32.mrf.mxu3 }
 0x129   : > { %v446_v58 = vadd.f32 %v672_v48, %v445_v57 }
 0x12b   : > { %v453_v59 = vmul.f32 0.01, %v446_v58 }
 0x12d   : > { %v457_v60 = vmax.f32 %v446_v58, %v453_v59 }
 0x12f   : > { %627 = vmatmul.msk.f32.gmra.mxu2 %vm471_vm2, %v457_v60 }
 0x130   : > { %v448_v61 = vpop.f32.mrf.mxu3 }
 0x131   : > { %v449_v62 = vadd.f32 %v672_v48, %v448_v61 }
 0x133   : > { %v454_v63 = vmul.f32 0.01, %v449_v62 }
 0x135   : > { %v458_v0 = vmax.f32 %v449_v62, %v454_v63 }
 0x137   : > { %628 = vmatmul.msk.f32.gmra.mxu2 %vm471_vm2, %v458_v0 }
 0x19c   : > { %v501_v2 = vpop.f32.mrf.mxu2 }
 0x19d   : > { %v502_v3 = vadd.f32 %v673_v1, %v501_v2 }
 0x19f   : > { %v513_v4 = vmul.f32 0.01, %v502_v3 }
 0x1a1   : > { %v517_v6 = vmax.f32 %v502_v3, %v513_v4 }
 0x1a3   : > { %v525_v7 = vmul.f32 %v674_v5, %v517_v6 }
 0x1a4   : > { %v504_v8 = vpop.f32.mrf.mxu2 }
 0x1a5   : > { %v505_v9 = vadd.f32 %v673_v1, %v504_v8  ;;  %v530_v10 = vsel %vm529_vm3, %v525_v7, 0.0 }
 0x1a6   : > { %531 = vadd.xlane.f32.xlu0 %v530_v10 }
 0x1a7   : > { %v514_v11 = vmul.f32 0.01, %v505_v9 }
 0x1a9   : > { %v518_v12 = vmax.f32 %v505_v9, %v514_v11 }
 0x1ab   : > { %v526_v13 = vmul.f32 %v674_v5, %v518_v12 }
 0x1ad   : > { %v533_v14 = vsel %vm529_vm3, %v526_v13, 0.0 }
 0x1ae   : > { %534 = vadd.xlane.f32.xlu0 %v533_v14 }
 0x1b2   : > { %v507_v15 = vpop.f32.mrf.mxu2 }
 0x1b3   : > { %v508_v16 = vadd.f32 %v673_v1, %v507_v15 }
 0x1b5   : > { %v515_v17 = vmul.f32 0.01, %v508_v16 }
 0x1b7   : > { %v519_v18 = vmax.f32 %v508_v16, %v515_v17 }
 0x1b9   : > { %v527_v19 = vmul.f32 %v674_v5, %v519_v18 }
 0x1ba   : > { %v510_v20 = vpop.f32.mrf.mxu2 }
 0x1bb   : > { %v511_v21 = vadd.f32 %v673_v1, %v510_v20  ;;  %v536_v22 = vsel %vm529_vm3, %v527_v19, 0.0 }
 0x1bc   : > { %537 = vadd.xlane.f32.xlu1 %v536_v22 }
 0x1bd   : > { %v516_v23 = vmul.f32 0.01, %v511_v21 }
 0x1bf   : > { %v520_v24 = vmax.f32 %v511_v21, %v516_v23 }
 0x1c1   : > { %v528_v25 = vmul.f32 %v674_v5, %v520_v24 }
 0x1c3   : > { %v539_v26 = vsel %vm529_vm3, %v528_v25, 0.0 }
 0x1c4   : > { %540 = vadd.xlane.f32.xlu1 %v539_v26 }
 0x219   : > { %v532_v28 = vpop.xlane.xlu0 %531 }
 0x21a   : > { %v546_v29 = vadd.f32 %v675_v27, %v532_v28 }
 0x21c   : > { %551 = vst.msk [vmem:[%s336_s22] sm:$0xff] %vm550_vm4, %v546_v29 }
 0x221   : > { %v535_v30 = vpop.xlane.xlu0 %534 }
 0x222   : > { %v547_v31 = vadd.f32 %v675_v27, %v535_v30 }
 0x224   : > { %552 = vst.msk [vmem:[%s336_s22 + $0x8] sm:$0xff] %vm550_vm4, %v547_v31 }
 0x22f   : > { %v538_v32 = vpop.xlane.xlu1 %537 }
 0x230   : > { %v548_v33 = vadd.f32 %v675_v27, %v538_v32 }
 0x232   : > { %553 = vst.msk [vmem:[%s336_s22 + $0x10] sm:$0xff] %vm550_vm4, %v548_v33 }
 0x237   : > { %v541_v34 = vpop.xlane.xlu1 %540 }
 0x238   : > { %v549_v35 = vadd.f32 %v675_v27, %v541_v34 }
 0x23a   : > { %554 = vst.msk [vmem:[%s336_s22 + $0x18] sm:$0xff] %vm550_vm4, %v549_v35 }
 0x23b PF: > { %s21_s11 = sadd.s32 1, %s682_s11  }
 0x23c   : > { %p18_p4 = scmp.ge.s32.totalorder %s21_s11, 4  }
 0x23e   :  { %20 = sbr.rel (!%p18_p4) target bundleno = 3 (0x3), region = 86 }

</bundles_post_ra>
